<compile_context>
chip_gen: v7x
topology: tpu7x:2x2x1
jax: 0.10.0
libtpu: 0.0.40
codegen_flags: <defaults>
</compile_context>

<pallas_src>
import jax
import jax.numpy as jnp
from jax.experimental import pallas as pl
from jax.experimental.pallas import tpu as pltpu


def _round_up(x, m):
    return ((x + m - 1) // m) * m


def _pick_tb(b_pad, d):
    """Largest batch tile (multiple of 256) fitting a VMEM budget; prefer >=2 grid steps."""
    d8 = max(d, 8)
    # Per-batch-column VMEM bytes for one grid step: x tile f32 (double-buffered),
    # in-kernel bf16 copy, f32 h1/h2 intermediates (+ bf16 copies / output slack).
    per_col = 2 * d8 * 4 + d8 * 2 + (64 + 32) * 6 + 16
    budget = 24 * 1024 * 1024          # headroom under the 32 MiB scoped VMEM limit
    tb_cap = max(256, (budget // per_col) // 256 * 256)
    cands = (4096, 2048, 1024, 512, 256)
    for t in cands:                    # prefer >= 2 tiles (megacore / v7x dual-TC)
        if t <= tb_cap and b_pad % t == 0 and b_pad // t >= 2:
            return t
    for t in cands:
        if t <= tb_cap and b_pad % t == 0:
            return t
    return 256


def _mlp_kernel(x_ref, w1t_ref, b1_ref, w2t_ref, b2_ref, w3_ref, b3_ref, o_ref):
    # x tile arrives feature-major (D, TB) f32; cast to bf16 on the VPU (free-ish).
    xt = x_ref[...].astype(jnp.bfloat16)                                 # (D, TB)
    # Layer 1: (64, D) @ (D, TB) -> f32 accumulate; bias + ReLU in f32.
    h1 = jnp.dot(w1t_ref[...], xt, preferred_element_type=jnp.float32)   # (64, TB)
    h1 = jnp.maximum(h1 + b1_ref[...], 0.0)
    # Layer 2: (32, 64) @ (64, TB) -> f32 accumulate.
    h2 = jnp.dot(w2t_ref[...], h1.astype(jnp.bfloat16),
                 preferred_element_type=jnp.float32)                     # (32, TB)
    h2 = jnp.maximum(h2 + b2_ref[...], 0.0)
    # Output layer (32 -> 1): weighted sublane reduce over 32 rows; the result is
    # already the lane-dense (1, TB) output row -- no relayout needed.
    out = jnp.sum(h2 * w3_ref[...], axis=0, keepdims=True) + b3_ref[...]  # (1, TB)
    o_ref[...] = out.astype(o_ref.dtype)


def simple_dnn_forward(x, params):
    """3-layer MLP forward, fused into one batch-in-lanes Pallas kernel.

    x: (B, input_dim) float32
    params: w1 (D,64), b1 (1,64), w2 (64,32), b2 (1,32), w3 (32,1), b3 (1,1)
    returns: (B, 1) float32
    """
    B, D = x.shape
    B_pad = _round_up(max(B, 1), 256)     # pad batch to 256 only, not to TB
    TB = _pick_tb(B_pad, D)
    num_tiles = B_pad // TB

    # Feature-major x (single fused pad+transpose pass; stays f32 -- bf16 cast
    # happens in-kernel, so x's HBM traffic is a single f32 read by the kernel).
    xT = jnp.pad(x, ((0, B_pad - B), (0, 0))).T                    # (D, B_pad) f32

    # Tiny weights: pre-transpose / cast once in the wrapper, pinned VMEM-resident.
    w1t = params["w1"].T.astype(jnp.bfloat16)                      # (64, D)
    w2t = params["w2"].T.astype(jnp.bfloat16)                      # (32, 64)
    b1 = params["b1"].reshape(64, 1).astype(jnp.float32)
    b2 = params["b2"].reshape(32, 1).astype(jnp.float32)
    w3 = params["w3"].reshape(32, 1).astype(jnp.float32)
    b3 = params["b3"].reshape(1, 1).astype(jnp.float32)

    flops = 2 * B_pad * (D * 64 + 64 * 32 + 32)
    bytes_accessed = (xT.size * 4 + B_pad * 4
                      + w1t.size * 2 + w2t.size * 2
                      + (b1.size + b2.size + w3.size + b3.size) * 4)

    out_row = pl.pallas_call(
        _mlp_kernel,
        out_shape=jax.ShapeDtypeStruct((1, B_pad), jnp.float32),
        grid=(num_tiles,),
        in_specs=[
            pl.BlockSpec((D, TB), lambda i: (0, i)),    # x: lane-dense batch tiles
            pl.BlockSpec((64, D), lambda i: (0, 0)),    # w1^T: VMEM-resident
            pl.BlockSpec((64, 1), lambda i: (0, 0)),    # b1 (column)
            pl.BlockSpec((32, 64), lambda i: (0, 0)),   # w2^T
            pl.BlockSpec((32, 1), lambda i: (0, 0)),    # b2 (column)
            pl.BlockSpec((32, 1), lambda i: (0, 0)),    # w3 (column, sublane reduce)
            pl.BlockSpec((1, 1), lambda i: (0, 0)),     # b3
        ],
        out_specs=pl.BlockSpec((1, TB), lambda i: (0, i)),  # lane-dense output row
        compiler_params=pltpu.CompilerParams(
            dimension_semantics=("parallel",),
            vmem_limit_bytes=32 * 1024 * 1024,
        ),
        cost_estimate=pl.CostEstimate(
            flops=flops, transcendentals=0, bytes_accessed=bytes_accessed),
    )(xT, w1t, b1, w2t, b2, w3, b3)

    return out_row.reshape(B_pad, 1)[:B]


def init_params(key, input_dim):
    """Deterministic init mimicking nn.Linear's uniform(-k, k), k = 1/sqrt(fan_in)."""
    ks = jax.random.split(key, 6)

    def linear(kw, kb, fan_in, fan_out):
        bound = 1.0 / jnp.sqrt(fan_in)
        w = jax.random.uniform(kw, (fan_in, fan_out), jnp.float32, -bound, bound)
        b = jax.random.uniform(kb, (1, fan_out), jnp.float32, -bound, bound)
        return w, b

    w1, b1 = linear(ks[0], ks[1], input_dim, 64)
    w2, b2 = linear(ks[2], ks[3], 64, 32)
    w3, b3 = linear(ks[4], ks[5], 32, 1)
    return {"w1": w1, "b1": b1, "w2": w2, "b2": b2, "w3": w3, "b3": b3}


def reference_forward(x, p):
    """Reference matching the kernel's numerics (bf16 matmul operands, f32 accum).

    The pure-f32 PyTorch result differs only by bf16 rounding of the matmul
    operands (relative error ~1e-3 at these scales / small input_dim).
    """
    xb = x.astype(jnp.bfloat16)
    w1b = p["w1"].astype(jnp.bfloat16)
    w2b = p["w2"].astype(jnp.bfloat16)
    h1 = jnp.maximum(
        jnp.dot(xb, w1b, preferred_element_type=jnp.float32) + p["b1"], 0.0)
    h2 = jnp.maximum(
        jnp.dot(h1.astype(jnp.bfloat16), w2b, preferred_element_type=jnp.float32)
        + p["b2"], 0.0)
    return jnp.dot(h2, p["w3"]) + p["b3"]


if __name__ == "__main__":
    key = jax.random.PRNGKey(0)
    k_x, k_p = jax.random.split(key)

    batch, input_dim = 8, 16
    x = jax.random.normal(k_x, (batch, input_dim), jnp.float32)
    params = init_params(k_p, input_dim)

    out = simple_dnn_forward(x, params)
    out = jax.block_until_ready(out)

    ref = reference_forward(x, params)
    assert out.shape == (batch, 1), out.shape
    assert jnp.allclose(out, ref, atol=1e-3, rtol=1e-3), "mismatch vs reference"

    print("KERNEL_OK")
</pallas_src>

<mosaic_0001>
module attributes {stable_mosaic.version = 11 : i64} {
  func.func @_mlp_kernel(%arg0: i32, %arg1: memref<16x256xf32, #tpu.memory_space<vmem>>, %arg2: memref<64x16xbf16, #tpu.memory_space<vmem>>, %arg3: memref<64x1xf32, #tpu.memory_space<vmem>>, %arg4: memref<32x64xbf16, #tpu.memory_space<vmem>>, %arg5: memref<32x1xf32, #tpu.memory_space<vmem>>, %arg6: memref<32x1xf32, #tpu.memory_space<vmem>>, %arg7: memref<1x1xf32, #tpu.memory_space<vmem>>, %arg8: memref<1x256xf32, #tpu.memory_space<vmem>>) attributes {dimension_semantics = [#tpu.dimension_semantics<parallel>], iteration_bounds = array<i64: 1>, scalar_prefetch = 0 : i64, scratch_operands = 0 : i64, tpu.core_type = #tpu.core_type<tc>, window_params = [{transform_indices = @transform_0, window_bounds = array<i64: 16, 256>}, {pipeline_mode = #tpu.pipeline_mode<synchronous>, transform_indices = @transform_1, window_bounds = array<i64: 64, 16>}, {pipeline_mode = #tpu.pipeline_mode<synchronous>, transform_indices = @transform_2, window_bounds = array<i64: 64, 1>}, {pipeline_mode = #tpu.pipeline_mode<synchronous>, transform_indices = @transform_3, window_bounds = array<i64: 32, 64>}, {pipeline_mode = #tpu.pipeline_mode<synchronous>, transform_indices = @transform_4, window_bounds = array<i64: 32, 1>}, {pipeline_mode = #tpu.pipeline_mode<synchronous>, transform_indices = @transform_5, window_bounds = array<i64: 32, 1>}, {pipeline_mode = #tpu.pipeline_mode<synchronous>, transform_indices = @transform_6, window_bounds = array<i64: 1, 1>}, {transform_indices = @transform_7, window_bounds = array<i64: 1, 256>}]} {
    %c0 = arith.constant 0 : index
    %c0_0 = arith.constant 0 : index
    %0 = vector.load %arg1[%c0, %c0_0] : memref<16x256xf32, #tpu.memory_space<vmem>>, vector<16x256xf32>
    %1 = arith.truncf %0 : vector<16x256xf32> to vector<16x256xbf16>
    %c0_1 = arith.constant 0 : index
    %c0_2 = arith.constant 0 : index
    %2 = vector.load %arg2[%c0_1, %c0_2] : memref<64x16xbf16, #tpu.memory_space<vmem>>, vector<64x16xbf16>
    %cst = arith.constant dense<0.000000e+00> : vector<64x256xf32>
    %3 = tpu.matmul %2, %1, %cst {dimension_numbers = #tpu.dot_dimension_numbers<[1], [0], [0], [1], [0, 0, 1, 1], [], []>} : vector<64x16xbf16>, vector<16x256xbf16>, vector<64x256xf32> -> vector<64x256xf32>
    %c0_3 = arith.constant 0 : index
    %c0_4 = arith.constant 0 : index
    %4 = vector.load %arg3[%c0_3, %c0_4] : memref<64x1xf32, #tpu.memory_space<vmem>>, vector<64x1xf32>
    %5 = vector.broadcast %4 : vector<64x1xf32> to vector<64x256xf32>
    %6 = arith.addf %3, %5 : vector<64x256xf32>
    %cst_5 = arith.constant 0.000000e+00 : f32
    %7 = vector.broadcast %cst_5 : f32 to vector<64x256xf32>
    %8 = arith.maximumf %6, %7 : vector<64x256xf32>
    %c0_6 = arith.constant 0 : index
    %c0_7 = arith.constant 0 : index
    %9 = vector.load %arg4[%c0_6, %c0_7] : memref<32x64xbf16, #tpu.memory_space<vmem>>, vector<32x64xbf16>
    %10 = arith.truncf %8 : vector<64x256xf32> to vector<64x256xbf16>
    %cst_8 = arith.constant dense<0.000000e+00> : vector<32x256xf32>
    %11 = tpu.matmul %9, %10, %cst_8 {dimension_numbers = #tpu.dot_dimension_numbers<[1], [0], [0], [1], [0, 0, 1, 1], [], []>} : vector<32x64xbf16>, vector<64x256xbf16>, vector<32x256xf32> -> vector<32x256xf32>
    %c0_9 = arith.constant 0 : index
    %c0_10 = arith.constant 0 : index
    %12 = vector.load %arg5[%c0_9, %c0_10] : memref<32x1xf32, #tpu.memory_space<vmem>>, vector<32x1xf32>
    %13 = vector.broadcast %12 : vector<32x1xf32> to vector<32x256xf32>
    %14 = arith.addf %11, %13 : vector<32x256xf32>
    %cst_11 = arith.constant 0.000000e+00 : f32
    %15 = vector.broadcast %cst_11 : f32 to vector<32x256xf32>
    %16 = arith.maximumf %14, %15 : vector<32x256xf32>
    %c0_12 = arith.constant 0 : index
    %c0_13 = arith.constant 0 : index
    %17 = vector.load %arg6[%c0_12, %c0_13] : memref<32x1xf32, #tpu.memory_space<vmem>>, vector<32x1xf32>
    %18 = vector.broadcast %17 : vector<32x1xf32> to vector<32x256xf32>
    %19 = arith.mulf %16, %18 : vector<32x256xf32>
    %cst_14 = arith.constant dense<0.000000e+00> : vector<256xf32>
    %20 = vector.multi_reduction <add>, %19, %cst_14 [0] : vector<32x256xf32> to vector<256xf32>
    %21 = vector.shape_cast %20 : vector<256xf32> to vector<1x256xf32>
    %c0_15 = arith.constant 0 : index
    %c0_16 = arith.constant 0 : index
    %22 = vector.load %arg7[%c0_15, %c0_16] : memref<1x1xf32, #tpu.memory_space<vmem>>, vector<1x1xf32>
    %23 = vector.broadcast %22 : vector<1x1xf32> to vector<1x256xf32>
    %24 = arith.addf %21, %23 : vector<1x256xf32>
    %c0_17 = arith.constant 0 : index
    %c0_18 = arith.constant 0 : index
    %25 = vector.load %arg8[%c0_17, %c0_18] : memref<1x256xf32, #tpu.memory_space<vmem>>, vector<1x256xf32>
    tpu.vector_store %arg8[%c0_17, %c0_18], %24 {strides = array<i32>} : memref<1x256xf32, #tpu.memory_space<vmem>>, vector<1x256xf32>,
    return
  }
  func.func @transform_0(%arg0: i32) -> (i32, i32) {
    %c0_i32 = arith.constant 0 : i32
    %c0_i32_0 = arith.constant 0 : i32
    return %c0_i32, %arg0 : i32, i32
  }
  func.func @transform_1(%arg0: i32) -> (i32, i32) {
    %c0_i32 = arith.constant 0 : i32
    %c0_i32_0 = arith.constant 0 : i32
    %c0_i32_1 = arith.constant 0 : i32
    return %c0_i32, %c0_i32_0 : i32, i32
  }
  func.func @transform_2(%arg0: i32) -> (i32, i32) {
    %c0_i32 = arith.constant 0 : i32
    %c0_i32_0 = arith.constant 0 : i32
    %c0_i32_1 = arith.constant 0 : i32
    return %c0_i32, %c0_i32_0 : i32, i32
  }
  func.func @transform_3(%arg0: i32) -> (i32, i32) {
    %c0_i32 = arith.constant 0 : i32
    %c0_i32_0 = arith.constant 0 : i32
    %c0_i32_1 = arith.constant 0 : i32
    return %c0_i32, %c0_i32_0 : i32, i32
  }
  func.func @transform_4(%arg0: i32) -> (i32, i32) {
    %c0_i32 = arith.constant 0 : i32
    %c0_i32_0 = arith.constant 0 : i32
    %c0_i32_1 = arith.constant 0 : i32
    return %c0_i32, %c0_i32_0 : i32, i32
  }
  func.func @transform_5(%arg0: i32) -> (i32, i32) {
    %c0_i32 = arith.constant 0 : i32
    %c0_i32_0 = arith.constant 0 : i32
    %c0_i32_1 = arith.constant 0 : i32
    return %c0_i32, %c0_i32_0 : i32, i32
  }
  func.func @transform_6(%arg0: i32) -> (i32, i32) {
    %c0_i32 = arith.constant 0 : i32
    %c0_i32_0 = arith.constant 0 : i32
    %c0_i32_1 = arith.constant 0 : i32
    return %c0_i32, %c0_i32_0 : i32, i32
  }
  func.func @transform_7(%arg0: i32) -> (i32, i32) {
    %c0_i32 = arith.constant 0 : i32
    %c0_i32_0 = arith.constant 0 : i32
    return %c0_i32, %arg0 : i32, i32
  }
}

</mosaic_0001>

<bundles_post_ra>
// kernel: tpu_custom_call.1
= control target key start
LH: loop header
LB: loop body
LE: loop exit
PB: predicated region body
PF: predicated region fallthrough
CT: control target
= control target key end

     0   :  { %s622_s0 = inlined_call_operand.vmem [shape: f32[16,256], index: 0, kind: input, shape index: {}]   ;;  %s623_s1 = inlined_call_operand.vmem [shape: bf16[64,16], index: 1, kind: input, shape index: {}]   ;;  %s624_s2 = inlined_call_operand.vmem [shape: f32[64,1], index: 2, kind: input, shape index: {}]   ;;  %s625_s3 = inlined_call_operand.vmem [shape: bf16[32,64], index: 3, kind: input, shape index: {}]   ;;  %s626_s4 = inlined_call_operand.vmem [shape: f32[32,1], index: 4, kind: input, shape index: {}]   ;;  %s627_s5 = inlined_call_operand.vmem [shape: f32[32,1], index: 5, kind: input, shape index: {}]   ;;  %s628_s6 = inlined_call_operand.<no memory space> [shape: f32[1,1], index: 6, kind: input, shape index: {}]   ;;  %s629_s7 = inlined_call_operand.hbm [shape: f32[1,256], index: 7, kind: output, shape index: {}]  }
   0x1   :  { %v12_v0 = vstv %s628_s6 }
   0x2   :  { %13 = vst [vmem:[#allocation2] sm:$0x1] %v12_v0 }
   0x3   :  { %v31_v1 = vld [vmem:[%s622_s0 + $0x8] sm:$0xff]  ;;  %v33_v2 = vld [vmem:[%s622_s0 + $0x18] sm:$0xff]  ;;  %v30_v3 = vld [vmem:[%s622_s0] sm:$0xff]  ;;  %v474_v6 = vmov 0   ;;  %vm112_vm0 = vcmask 130048  }
   0x4   :  { %v35_v4 = vpack.c.bf16 %v33_v2, %v31_v1  ;;  %v32_v5 = vld [vmem:[%s622_s0 + $0x10] sm:$0xff]  ;;  %157 = vmatprep.mubr.bf16.mxu0 %v474_v6  ;;  %442 = vset.pattern.permute.xlu0 %v474_v6  ;;  %v444_v8 = vld [vmem:[%s623_s1] sm:$0xff]   ;;  %v45_v11 = vld [vmem:[%s624_s2 + $0x8] sm:$0xff] }
   0x5   :  { %v34_v7 = vpack.c.bf16 %v32_v5, %v30_v3  ;;  %443 = vset.pattern.permute.xlu1 %v474_v6  ;;  %299 = vmatprep.mubr.bf16.mxu1 %v474_v6  ;;  %v44_v9 = vld [vmem:[%s624_s2] sm:$0xff]  ;;  %v46_v10 = vld [vmem:[%s624_s2 + $0x10] sm:$0xff]  ;;  %v47_v12 = vld [vmem:[%s624_s2 + $0x18] sm:$0xff] }
   0x6   :  { %125 = vmatprep.subr.bf16.mxu0 %v35_v4  ;;  %54 = vperm.xlu0 %442, %v44_v9   ;;  %v445_v13 = vld [vmem:[%s623_s1 + $0x8] sm:$0xff]   ;;  %v48_v14 = vld [vmem:[%s624_s2 + $0x20] sm:$0xff] }
   0x7   :  { %126 = vmatpush1.bf16.msra.mxu0 %v34_v7  ;;  %64 = vperm.xlu1 %443, %v46_v10   ;;  %v49_v15 = vld [vmem:[%s624_s2 + $0x28] sm:$0xff] }
   0xa   :  { %431 = vmatmul.mubr.msk.bf16.vlgmr.msra.gmra.mrb[0].mxu0 %vm112_vm0, %v444_v8  ;;  %59 = vperm.xlu0 %442, %v45_v11  }
   0xb   :  { %167 = vmatprep.mubr.bf16.mxu0 %v474_v6  ;;  %69 = vperm.xlu1 %443, %v47_v12  }
   0xc   :  { %14 = vsyncpa [#allocation4], 0  ;;  %v50_v16 = vld [vmem:[%s624_s2 + $0x30] sm:$0xff]  ;;  %v51_v17 = vld [vmem:[%s624_s2 + $0x38] sm:$0xff]  ;;  %vm260_vm1 = vcmask 523264  }
   0xd   :  { %v446_v18 = vld [vmem:[%s623_s1 + $0x10] sm:$0xff]   ;;  %v226_v19 = vld [vmem:[%s626_s4] sm:$0xff]  ;;  %v227_v20 = vld [vmem:[%s626_s4 + $0x8] sm:$0xff] }
   0xe   :  { %74 = vperm.xlu0 %442, %v48_v14   ;;  %v228_v21 = vld [vmem:[%s626_s4 + $0x10] sm:$0xff]  ;;  %v229_v22 = vld [vmem:[%s626_s4 + $0x18] sm:$0xff]  ;;  %v328_v24 = vld [vmem:[%s627_s5] sm:$0xff] }
   0xf   :  { %79 = vperm.xlu1 %443, %v49_v15   ;;  %v447_v23 = vld [vmem:[%s623_s1 + $0x18] sm:$0xff]   ;;  %v329_v25 = vld [vmem:[%s627_s5 + $0x8] sm:$0xff]  ;;  %v330_v26 = vld [vmem:[%s627_s5 + $0x10] sm:$0xff] }
  0x10   :  { %v331_v27 = vld [vmem:[%s627_s5 + $0x18] sm:$0xff]  ;;  %v378_v28 = vld [vmem:[#allocation2] sm:$0x1] }
  0x12   :  { %432 = vmatmul.mubr.msk.bf16.gmra.mrb[4].mxu0 %vm112_vm0, %v445_v13  ;;  %84 = vperm.xlu0 %442, %v50_v16  }
  0x13   :  { %177 = vmatprep.mubr.bf16.mxu0 %v474_v6  ;;  %89 = vperm.xlu1 %443, %v51_v17  }
  0x16   :  { %232 = vperm.xlu0 %442, %v226_v19  }
  0x17   :  { %237 = vperm.xlu1 %443, %v227_v20  }
  0x1a   :  { %433 = vmatmul.mubr.msk.bf16.gmra.mrb[8].mxu0 %vm112_vm0, %v446_v18  ;;  %242 = vperm.xlu0 %442, %v228_v21  }
  0x1b   :  { %187 = vmatprep.mubr.bf16.mxu0 %v474_v6  ;;  %247 = vperm.xlu1 %443, %v229_v22  }
  0x1e   :  { %334 = vperm.xlu0 %442, %v328_v24  }
  0x1f   :  { %339 = vperm.xlu1 %443, %v329_v25  }
  0x22   :  { %434 = vmatmul.mubr.msk.bf16.gmra.mrb[12].mxu0 %vm112_vm0, %v447_v23  ;;  %344 = vperm.xlu0 %442, %v330_v26  }
  0x23   :  { %349 = vperm.xlu1 %443, %v331_v27  }
  0x26   :  { %381 = vperm.xlu0 %442, %v378_v28  }
  0x85   :  { %v55_v29 = vpop.permute.xlu0 %54 }
  0x86   :  { %v65_v38 = vpop.permute.xlu1 %64 }
  0x89   :  { %v60_v33 = vpop.permute.xlu0 %59 }
  0x8a   :  { %v70_v49 = vpop.permute.xlu1 %69 }
  0x8d   :  { %v75_v60 = vpop.permute.xlu0 %74 }
  0x8e   :  { %v80_v1 = vpop.permute.xlu1 %79 }
  0x91   :  { %v85_v13 = vpop.permute.xlu0 %84 }
  0x92   :  { %v90_v18 = vpop.permute.xlu1 %89 }
  0xdd   :  { %v159_v30 = vpop.f32.mrb[0].mxu0 }
  0xde   :  { %v160_v31 = vadd.f32 %v159_v30, %v55_v29  ;;  %v161_v32 = vpop.f32.mrb[1].mxu0  ;;  %v448_v30 = vld [vmem:[%s625_s3] sm:$0xff]  }
  0xdf   :  { %v162_v34 = vadd.f32 %v161_v32, %v55_v29  ;;  %v163_v35 = vpop.f32.mrb[2].mxu0  ;;  %v233_v32 = vpop.permute.xlu0 %232 }
  0xe0   :  { %v164_v36 = vadd.f32 %v163_v35, %v60_v33  ;;  %v165_v37 = vpop.f32.mrb[3].mxu0  ;;  %v198_v40 = vmax.f32 %v160_v31, 0.0  ;;  %v449_v31 = vld [vmem:[%s625_s3 + $0x8] sm:$0xff]   ;;  %s476_s3 = smov [#allocation3]  }
  0xe1   :  { %v166_v39 = vadd.f32 %v165_v37, %v60_v33  ;;  %v199_v42 = vmax.f32 %v162_v34, 0.0  ;;  %v238_v33 = vpop.permute.xlu1 %237  ;;  %s419_s24 = sshll.u32 %s476_s3, 4  ;;  %s420_s24 = int_to_ptr.vmem [resolvable:$true] %s419_s24 }
  0xe2   :  { %v200_v41 = vmax.f32 %v164_v36, 0.0  ;;  %s450_s25 = scalar_lea.vmem %s420_s24, 32  ;;  %p455_p1 = scmp.lt.s32.totalorder %s420_s24, %s420_s24 }
  0xe3   :  { %v201_v43 = vmax.f32 %v166_v39, 0.0  ;;  %v243_v34 = vpop.permute.xlu0 %242  ;;  %p451_p0 = scmp.ne.s32.totalorder %s420_s24, %s450_s25  ;;  %p456_p2 = scmp.lt.s32.totalorder %s450_s25, %s450_s25 }
  0xe4   :  { %v218_v44 = vpack.c.bf16 %v200_v41, %v198_v40 }
  0xe5   :  { %v169_v45 = vpop.f32.mrb[4].mxu0  ;;  %v219_v46 = vpack.c.bf16 %v201_v43, %v199_v42  ;;  %v248_v35 = vpop.permute.xlu1 %247  ;;  %p457_p3 = por %p456_p2, %p455_p1 }
  0xe6   :  { %v170_v47 = vadd.f32 %v169_v45, %v65_v38  ;;  %v171_v48 = vpop.f32.mrb[5].mxu0 }
  0xe7   :  { %v172_v50 = vadd.f32 %v171_v48, %v65_v38  ;;  %v173_v51 = vpop.f32.mrb[6].mxu0  ;;  %267 = vmatprep.subr.bf16.mxu1 %v219_v46  ;;  %v335_v46 = vpop.permute.xlu0 %334  ;;  %p458_p4 = pnand %p457_p3, %p451_p0 }
  0xe8   :  { %v174_v52 = vadd.f32 %v173_v51, %v70_v49  ;;  %v175_v53 = vpop.f32.mrb[7].mxu0  ;;  %268 = vmatpush1.bf16.msra.mxu1 %v218_v44  ;;  %v202_v55 = vmax.f32 %v170_v47, 0.0 }
  0xe9   :  { %v176_v54 = vadd.f32 %v175_v53, %v70_v49  ;;  %v203_v57 = vmax.f32 %v172_v50, 0.0  ;;  %v340_v47 = vpop.permute.xlu1 %339 }
  0xea   :  { %v204_v56 = vmax.f32 %v174_v52, 0.0 }
  0xeb   :  { %v205_v58 = vmax.f32 %v176_v54, 0.0 }
  0xec   :  { %v220_v59 = vpack.c.bf16 %v204_v56, %v202_v55 }
  0xed   :  { %v221_v61 = vpack.c.bf16 %v205_v58, %v203_v57  ;;  %v179_v62 = vpop.f32.mrb[8].mxu0 }
  0xee   :  { %v180_v63 = vadd.f32 %v179_v62, %v75_v60  ;;  %v181_v0 = vpop.f32.mrb[9].mxu0 }
  0xef   :  { %v182_v2 = vadd.f32 %v181_v0, %v75_v60  ;;  %v183_v3 = vpop.f32.mrb[10].mxu0  ;;  %269 = vmatprep.subr.bf16.mxu1 %v221_v61 }
  0xf0   :  { %v184_v4 = vadd.f32 %v183_v3, %v80_v1  ;;  %v185_v5 = vpop.f32.mrb[11].mxu0  ;;  %270 = vmatpush1.bf16.msra.mxu1 %v220_v59  ;;  %v206_v8 = vmax.f32 %v180_v63, 0.0  ;;  %v345_v63 = vpop.permute.xlu0 %344 }
  0xf1   :  { %v186_v7 = vadd.f32 %v185_v5, %v80_v1  ;;  %v207_v10 = vmax.f32 %v182_v2, 0.0 }
  0xf2   :  { %v208_v9 = vmax.f32 %v184_v4, 0.0  ;;  %v350_v4 = vpop.permute.xlu1 %349 }
  0xf3   :  { %v209_v11 = vmax.f32 %v186_v7, 0.0 }
  0xf4   :  { %v222_v12 = vpack.c.bf16 %v208_v9, %v206_v8 }
  0xf5   :  { %v223_v14 = vpack.c.bf16 %v209_v11, %v207_v10  ;;  %v189_v15 = vpop.f32.mrb[12].mxu0 }
  0xf6   :  { %v190_v16 = vadd.f32 %v189_v15, %v85_v13  ;;  %v191_v17 = vpop.f32.mrb[13].mxu0 }
  0xf7   :  { %v192_v19 = vadd.f32 %v191_v17, %v85_v13  ;;  %v193_v20 = vpop.f32.mrb[14].mxu0  ;;  %271 = vmatprep.subr.bf16.mxu1 %v223_v14 }
  0xf8   :  { %v194_v21 = vadd.f32 %v193_v20, %v90_v18  ;;  %v195_v22 = vpop.f32.mrb[15].mxu0  ;;  %272 = vmatpush1.bf16.msra.mxu1 %v222_v12  ;;  %v210_v24 = vmax.f32 %v190_v16, 0.0  ;;  %v384_v12 = vlaneseq }
  0xf9   :  { %v196_v23 = vadd.f32 %v195_v22, %v90_v18  ;;  %v211_v26 = vmax.f32 %v192_v19, 0.0  ;;  %v475_v22 = vmov 1966171168  }
  0xfa   :  { %v212_v25 = vmax.f32 %v194_v21, 0.0  ;;  %v385_v17 = vshrl.u32 %v384_v12, 7  ;;  %vm410_vm2 = vcmp.lt.s32.totalorder %v384_v12, 256 }
  0xfb   :  { %v213_v27 = vmax.f32 %v196_v23, 0.0  ;;  %v394_v23 = vunpack.c.l.s4 %v475_v22 }
  0xfc   :  { %v224_v28 = vpack.c.bf16 %v212_v25, %v210_v24  ;;  %v386_v24 = vsub.s32 0, %v385_v17 }
  0xfd   :  { %v225_v29 = vpack.c.bf16 %v213_v27, %v211_v26  ;;  %v382_v26 = vpop.permute.xlu0 %381 }
  0xff   :  { %273 = vmatprep.subr.bf16.mxu1 %v225_v29 }
 0x100   :  { %274 = vmatpush1.bf16.msra.mxu1 %v224_v28 }
 0x103   :  { %437 = vmatmul.mubr.msk.bf16.vlgmr.msra.gmra.mrb[0].mxu1 %vm260_vm1, %v448_v30  ;;  %v395_v30 = vunpack.c.0.s8 %v394_v23 }
 0x104   :  { %309 = vmatprep.mubr.bf16.mxu1 %v474_v6 }
 0x10b   :  { %438 = vmatmul.mubr.msk.bf16.gmra.mrb[4].mxu1 %vm260_vm1, %v449_v31  ;;  %v387_v31 = vrot.slane %v382_v26, %v386_v24 }
 0x1d6   :  { %v301_v36 = vpop.f32.mrb[0].mxu1 }
 0x1d7   :  { %v302_v37 = vadd.f32 %v301_v36, %v233_v32  ;;  %v303_v38 = vpop.f32.mrb[1].mxu1  ;;  %v398_v36 = vsub.s32 %v395_v30, %v385_v17 }
 0x1d8   :  { %v304_v39 = vadd.f32 %v303_v38, %v233_v32  ;;  %v305_v40 = vpop.f32.mrb[2].mxu1 }
 0x1d9   :  { %v320_v41 = vmax.f32 %v302_v37, 0.0  ;;  %v306_v42 = vadd.f32 %v305_v40, %v238_v33  ;;  %v307_v43 = vpop.f32.mrb[3].mxu1 }
 0x1da   :  { %v321_v44 = vmax.f32 %v304_v39, 0.0  ;;  %v308_v45 = vadd.f32 %v307_v43, %v238_v33 }
 0x1db   :  { %v322_v6 = vmax.f32 %v306_v42, 0.0  ;;  %v352_v49 = vmul.f32 %v335_v46, %v320_v41 }
 0x1dc   :  { %v323_v48 = vmax.f32 %v308_v45, 0.0  ;;  %v353_v51 = vmul.f32 %v335_v46, %v321_v44 }
 0x1dd   :  { %v354_v50 = vmul.f32 %v340_v47, %v322_v6 }
 0x1de   :  { %v355_v52 = vmul.f32 %v340_v47, %v323_v48  ;;  %v311_v53 = vpop.f32.mrb[4].mxu1 }
 0x1df   :  { %v360_v54 = vadd.f32 %v354_v50, %v352_v49  ;;  %v312_v55 = vadd.f32 %v311_v53, %v243_v34  ;;  %v313_v56 = vpop.f32.mrb[5].mxu1 }
 0x1e0   :  { %v369_v57 = vadd.f32 %v355_v52, %v353_v51  ;;  %v314_v58 = vadd.f32 %v313_v56, %v243_v34  ;;  %v315_v59 = vpop.f32.mrb[6].mxu1 }
 0x1e1   :  { %v324_v60 = vmax.f32 %v312_v55, 0.0  ;;  %v316_v61 = vadd.f32 %v315_v59, %v248_v35  ;;  %v317_v62 = vpop.f32.mrb[7].mxu1 }
 0x1e2   :  { %v325_v0 = vmax.f32 %v314_v58, 0.0  ;;  %v318_v1 = vadd.f32 %v317_v62, %v248_v35 }
 0x1e3   :  { %v356_v2 = vmul.f32 %v345_v63, %v324_v60  ;;  %v326_v3 = vmax.f32 %v316_v61, 0.0 }
 0x1e4   :  { %v357_v5 = vmul.f32 %v345_v63, %v325_v0  ;;  %v327_v7 = vmax.f32 %v318_v1, 0.0 }
 0x1e5   :  { %v361_v8 = vadd.f32 %v360_v54, %v356_v2  ;;  %v358_v9 = vmul.f32 %v350_v4, %v326_v3 }
 0x1e6   :  { %v370_v10 = vadd.f32 %v369_v57, %v357_v5  ;;  %v359_v11 = vmul.f32 %v350_v4, %v327_v7 }
 0x1e7   :  { %v362_v13 = vadd.f32 %v361_v8, %v358_v9 }
 0x1e8   :  { %v371_v14 = vadd.f32 %v370_v10, %v359_v11 }
 0x1e9   :  { %v363_v15 = vrot.slane %v362_v13, 4 }
 0x1ea   :  { %v372_v16 = vrot.slane %v371_v14, 4 }
 0x1eb   :  { %v364_v18 = vadd.f32 %v363_v15, %v362_v13 }
 0x1ec   :  { %v373_v19 = vadd.f32 %v372_v16, %v371_v14 }
 0x1ed   :  { %v365_v20 = vrot.slane %v364_v18, 2 }
 0x1ee   :  { %v374_v21 = vrot.slane %v373_v19, 2 }
 0x1ef   :  { %v366_v25 = vadd.f32 %v365_v20, %v364_v18 }
 0x1f0   :  { %v375_v27 = vadd.f32 %v374_v21, %v373_v19 }
 0x1f1   :  { %v367_v28 = vrot.slane %v366_v25, 1 }
 0x1f2   :  { %v376_v29 = vrot.slane %v375_v27, 1 }
 0x1f3   :  { %v368_v32 = vadd.f32 %v367_v28, %v366_v25 }
 0x1f4   :  { %v377_v33 = vadd.f32 %v376_v29, %v375_v27 }
 0x1f5   :  { %v388_v34 = vadd.f32 %v387_v31, %v368_v32 }
 0x1f6   :  { %v389_v35 = vadd.f32 %v387_v31, %v377_v33 }
 0x1f8   :  { %v392_v37 = vcombine.low %v388_v34, %v389_v35 }
 0x1fa   :  { %v399_v38 = vrot.slane %v392_v37, %v398_v36 }
 0x1fc   :  { %v406_v39 = vrot.slane %v399_v38, %v398_v36 }
 0x1fe   :  { %412 = vst.msk [vmem:[#allocation3] sm:$0x3] %vm410_vm2, %v406_v39 }
 0x1ff   :  { %461 = shalt.err (!%p458_p4)
}
 0x200   :  { %s462_s28 = scalar_lea.hbm %s629_s7, 32 }
 0x201   :  { %p463_p5 = scmp.ne.s32.totalorder %s629_s7, %s462_s28  ;;  %p466_p6 = scmp.lt.u32.totalorder %s462_s28, %s629_s7 }
 0x203   :  { %p468_p7 = pnand %p466_p6, %p463_p5 }
 0x205   :  { %471 = shalt.err (!%p468_p7)
}
 0x206   :  { %422 = dma.vmem_to_hbm [thread:$0]  %s420_s24, 32, %s629_s7, [#allocation4]  }
 0x207   :  { %472 = dma.done.wait [#allocation4], 32  }
 0x208   :  { %473 = vsyncadd [#allocation4], 4294967264 }
 0x209   :  { %426 = vsyncpa [#allocation4], 1 }

</bundles_post_ra>
